<compile_context>
chip_gen: v6e
topology: v6e:2x2x1
jax: 0.10.0
libtpu: 0.0.40
codegen_flags: <defaults>
</compile_context>

<pallas_src>
import functools
import math

import jax
import jax.numpy as jnp
from jax import lax
from jax.experimental import pallas as pl
from jax.experimental.pallas import tpu as pltpu

_SCALE = 10.0 / math.log(10.0)      # 10 / ln(10), as in the PyTorch module
_EPS = 1e-8

_LANE = 128
_SUB = 512                           # rows per inner accumulation slab
_TARGET_BLOCK_BYTES_PLAIN = 4 * 1024 * 1024   # per-input per-grid-step
_TARGET_BLOCK_BYTES_TOY = 3 * 1024 * 1024


def _round_up(x, m):
    return (x + m - 1) // m * m


def _psnr_kernel(pred_ref, target_ref, out_ref, *,
                 to_y, rows, row_tile, inner, need_mask):
    """Accumulate sum((pred - target)^2) for one (sample, group) into out_ref.

    out_ref block is (1, 1, 8, 128) f32 and stays resident across the chunk
    ("arbitrary") grid axis; the final cross-lane reduce happens in JAX.
    """
    g = pl.program_id(1)
    j = pl.program_id(2)
    cpg = pl.num_programs(2)

    @pl.when(j == 0)
    def _():
        out_ref[...] = jnp.zeros_like(out_ref)

    # Global row offset of this chunk (logical, un-clamped: phantom chunks of
    # the last group land past `rows` and are fully masked below).
    base_row = (g * cpg + j) * row_tile

    def accumulate(r0):
        if to_y:
            # Folded RGB->Y difference (the +16 and the /255 scalings cancel).
            dr = (pred_ref[0, 0, pl.ds(r0, inner), :].astype(jnp.float32)
                  - target_ref[0, 0, pl.ds(r0, inner), :].astype(jnp.float32))
            dg = (pred_ref[0, 1, pl.ds(r0, inner), :].astype(jnp.float32)
                  - target_ref[0, 1, pl.ds(r0, inner), :].astype(jnp.float32))
            db = (pred_ref[0, 2, pl.ds(r0, inner), :].astype(jnp.float32)
                  - target_ref[0, 2, pl.ds(r0, inner), :].astype(jnp.float32))
            diff = (65.481 * dr + 128.553 * dg + 24.966 * db) * jnp.float32(1.0 / 255.0)
        else:
            diff = (pred_ref[0, pl.ds(r0, inner), :].astype(jnp.float32)
                    - target_ref[0, pl.ds(r0, inner), :].astype(jnp.float32))
        sq = diff * diff
        if need_mask:
            # Zero contributions from rows past the true data extent (ragged
            # last chunk / phantom chunk / block larger than a tiny input).
            rid = base_row + r0 + lax.broadcasted_iota(jnp.int32, (inner, 1), 0)
            sq = jnp.where(rid < rows, sq, jnp.float32(0.0))
        # Element-wise (VPU) accumulation of sublane groups into the resident
        # (8, 128) output slab; the XLU cross-lane reduce happens once, in JAX.
        out_ref[0, 0, :, :] += jnp.sum(sq.reshape(inner // 8, 8, _LANE), axis=0)

    n_sub = row_tile // inner
    if n_sub == 1:
        accumulate(0)
    else:
        # Sub-slab loop caps live f32 temps to ~inner*128*4 bytes regardless
        # of row_tile (keeps big v7x tiles inside the VMEM budget).
        @pl.loop(0, n_sub)
        def _(s):
            accumulate(pl.multiple_of(s * inner, inner))


def psnr_loss(pred, target, *, loss_weight=1.0, to_y=False):
    """JAX/Pallas equivalent of mmedit PSNRLoss(loss_weight, 'mean', toY).forward."""
    assert pred.shape == target.shape
    n, c, h, w = pred.shape

    itemsize = jnp.dtype(pred.dtype).itemsize
    granule = {4: 8, 2: 16, 1: 32}.get(itemsize, 8)   # min sublane tile per dtype

    if to_y:
        assert c == 3, "toY requires 3 input channels"
        n_elem = h * w                                 # per-sample elements after Y
        per_row_bytes = 3 * _LANE * itemsize
        target_bytes = _TARGET_BLOCK_BYTES_TOY
    else:
        n_elem = c * h * w
        per_row_bytes = _LANE * itemsize
        target_bytes = _TARGET_BLOCK_BYTES_PLAIN

    rows = pl.cdiv(n_elem, _LANE)        # full 128-wide rows (last may be partial)
    rem = rows * _LANE - n_elem          # sub-128 remainder (0 for typical images)

    # Max rows per grid step: keep ~target_bytes per input per step, multiple of _SUB.
    max_rows = max(_SUB, (target_bytes // per_row_bytes) // _SUB * _SUB)

    if rows >= max_rows:
        row_tile = max_rows
    elif rows > _SUB:
        row_tile = _round_up(rows, _SUB)
    else:
        row_tile = _round_up(rows, granule)
    inner = min(row_tile, _SUB)          # row_tile % inner == 0 by construction

    n_chunks = pl.cdiv(rows, row_tile)
    n_groups = 2 if n_chunks >= 2 else 1          # second "parallel" axis for v7x TCs
    cpg = pl.cdiv(n_chunks, n_groups)             # chunks per group
    need_mask = (n_groups * cpg * row_tile != rows)

    # Zero-copy reshape when n_elem % 128 == 0 (the common case).  Otherwise a
    # single tiny pad (< 128 zeros per sample/channel) brings the flattened
    # length to the next multiple of 128; the zeros contribute 0 to the diff.
    def prep(x):
        if to_y:
            xf = x.reshape(n, 3, n_elem)
            if rem:
                xf = jnp.pad(xf, ((0, 0), (0, 0), (0, rem)))
            return xf.reshape(n, 3, rows, _LANE)
        xf = x.reshape(n, n_elem)
        if rem:
            xf = jnp.pad(xf, ((0, 0), (0, rem)))
        return xf.reshape(n, rows, _LANE)

    pred_p = prep(pred)
    target_p = prep(target)

    last_chunk = n_chunks - 1
    if to_y:
        in_block = (1, 3, row_tile, _LANE)
        in_map = lambda i, g, j: (i, 0, jnp.minimum(g * cpg + j, last_chunk), 0)
    else:
        in_block = (1, row_tile, _LANE)
        in_map = lambda i, g, j: (i, jnp.minimum(g * cpg + j, last_chunk), 0)

    kernel = functools.partial(_psnr_kernel, to_y=to_y, rows=rows,
                               row_tile=row_tile, inner=inner,
                               need_mask=need_mask)

    partials = pl.pallas_call(
        kernel,
        out_shape=jax.ShapeDtypeStruct((n, n_groups, 8, _LANE), jnp.float32),
        grid_spec=pltpu.PrefetchScalarGridSpec(
            num_scalar_prefetch=0,
            grid=(n, n_groups, cpg),
            in_specs=[
                pl.BlockSpec(in_block, in_map),
                pl.BlockSpec(in_block, in_map),
            ],
            out_specs=pl.BlockSpec((1, 1, 8, _LANE),
                                   lambda i, g, j: (i, g, 0, 0)),
        ),
        compiler_params=pltpu.CompilerParams(
            dimension_semantics=("parallel", "parallel", "arbitrary"),
            vmem_limit_bytes=48 * 1024 * 1024),
    )(pred_p, target_p)

    # Tiny JAX epilogue: per-sample sum -> MSE -> log -> batch mean -> scale.
    sq_sum = jnp.sum(partials, axis=(1, 2, 3))           # (n,)
    mse = sq_sum / jnp.float32(n_elem)
    return jnp.float32(loss_weight * _SCALE) * jnp.mean(
        jnp.log(mse + jnp.float32(_EPS)))


def _psnr_loss_ref(pred, target, *, loss_weight=1.0, to_y=False):
    """Pure-JAX reference mirroring the PyTorch forward."""
    pred = pred.astype(jnp.float32)
    target = target.astype(jnp.float32)
    if to_y:
        coef = jnp.array([65.481, 128.553, 24.966],
                         dtype=jnp.float32).reshape(1, 3, 1, 1)
        pred = (jnp.sum(pred * coef, axis=1, keepdims=True) + 16.0) / 255.0
        target = (jnp.sum(target * coef, axis=1, keepdims=True) + 16.0) / 255.0
    mse = jnp.mean((pred - target) ** 2, axis=(1, 2, 3))
    return loss_weight * _SCALE * jnp.mean(jnp.log(mse + _EPS))


if __name__ == "__main__":
    key = jax.random.PRNGKey(0)
    k1, k2, k3, k4 = jax.random.split(key, 4)

    # Small NCHW inputs: batch=2, channels=3 (RGB, as the toY path implies), 16x16.
    pred = jax.random.uniform(k1, (2, 3, 16, 16), dtype=jnp.float32)
    target = jax.random.uniform(k2, (2, 3, 16, 16), dtype=jnp.float32)

    out = jax.block_until_ready(psnr_loss(pred, target, loss_weight=1.0))
    ref = _psnr_loss_ref(pred, target, loss_weight=1.0)
    assert jnp.allclose(out, ref, rtol=1e-4, atol=1e-5), (out, ref)

    # Fused (folded) toY path.
    out_y = jax.block_until_ready(psnr_loss(pred, target, loss_weight=1.0, to_y=True))
    ref_y = _psnr_loss_ref(pred, target, loss_weight=1.0, to_y=True)
    assert jnp.allclose(out_y, ref_y, rtol=1e-4, atol=1e-4), (out_y, ref_y)

    # bf16 inputs pass through the DMA unconverted (kernel accumulates in f32).
    out_bf = jax.block_until_ready(
        psnr_loss(pred.astype(jnp.bfloat16), target.astype(jnp.bfloat16)))
    ref_bf = _psnr_loss_ref(pred.astype(jnp.bfloat16), target.astype(jnp.bfloat16))
    assert jnp.allclose(out_bf, ref_bf, rtol=5e-3, atol=5e-3), (out_bf, ref_bf)

    # n_elem not a multiple of 128 (tiny-pad path) and batch of 1.
    pred_r = jax.random.uniform(k3, (1, 3, 17, 19), dtype=jnp.float32)
    target_r = jax.random.uniform(k4, (1, 3, 17, 19), dtype=jnp.float32)
    out_r = jax.block_until_ready(psnr_loss(pred_r, target_r, loss_weight=0.5))
    ref_r = _psnr_loss_ref(pred_r, target_r, loss_weight=0.5)
    assert jnp.allclose(out_r, ref_r, rtol=1e-4, atol=1e-5), (out_r, ref_r)

    # Medium image: multi-chunk + 2 parallel groups + ragged/phantom chunk
    # masking + inner sub-slab loop (batch=1, 3x960x896 -> 20160 rows).
    pred_m = jax.random.uniform(k3, (1, 3, 960, 896), dtype=jnp.float32)
    target_m = jax.random.uniform(k4, (1, 3, 960, 896), dtype=jnp.float32)
    out_m = jax.block_until_ready(psnr_loss(pred_m, target_m))
    ref_m = _psnr_loss_ref(pred_m, target_m)
    assert jnp.allclose(out_m, ref_m, rtol=1e-4, atol=1e-4), (out_m, ref_m)

    print("KERNEL_OK")
</pallas_src>

<mosaic_0001>
module attributes {stable_mosaic.version = 11 : i64} {
  func.func @_psnr_kernel(%arg0: i32, %arg1: i32, %arg2: i32, %arg3: memref<1x8x128xf32, #tpu.memory_space<vmem>>, %arg4: memref<1x8x128xf32, #tpu.memory_space<vmem>>, %arg5: memref<1x1x8x128xf32, #tpu.memory_space<vmem>>) attributes {dimension_semantics = [#tpu.dimension_semantics<parallel>, #tpu.dimension_semantics<parallel>, #tpu.dimension_semantics<arbitrary>], iteration_bounds = array<i64: 2, 1, 1>, scalar_prefetch = 0 : i64, scratch_operands = 0 : i64, tpu.core_type = #tpu.core_type<tc>, window_params = [{transform_indices = @transform_0, window_bounds = array<i64: 1, 8, 128>}, {transform_indices = @transform_1, window_bounds = array<i64: 1, 8, 128>}, {transform_indices = @transform_2, window_bounds = array<i64: 1, 1, 8, 128>}]} {
    %c0_i32 = arith.constant 0 : i32
    %0 = arith.cmpi eq, %arg2, %c0_i32 : i32
    %1 = arith.extui %0 : i1 to i32
    %c0_i32_0 = arith.constant 0 : i32
    %2 = arith.cmpi ne, %1, %c0_i32_0 : i32
    scf.if %2 {
      %cst_16 = arith.constant 0.000000e+00 : f32
      %30 = vector.broadcast %cst_16 : f32 to vector<1x1x8x128xf32>
      %c0_17 = arith.constant 0 : index
      %c0_18 = arith.constant 0 : index
      %c0_19 = arith.constant 0 : index
      %c0_20 = arith.constant 0 : index
      %31 = vector.load %arg5[%c0_17, %c0_18, %c0_19, %c0_20] : memref<1x1x8x128xf32, #tpu.memory_space<vmem>>, vector<1x1x8x128xf32>
      tpu.vector_store %arg5[%c0_17, %c0_18, %c0_19, %c0_20], %30 {strides = array<i32>} : memref<1x1x8x128xf32, #tpu.memory_space<vmem>>, vector<1x1x8x128xf32>,
    } else {
    }
    %c1_i32 = arith.constant 1 : i32
    %3 = arith.muli %arg1, %c1_i32 : i32
    %4 = arith.addi %3, %arg2 : i32
    %c8_i32 = arith.constant 8 : i32
    %5 = arith.muli %4, %c8_i32 : i32
    %c0 = arith.constant 0 : index
    %c0_1 = arith.constant 0 : index
    %c0_2 = arith.constant 0 : index
    %6 = vector.load %arg3[%c0, %c0_1, %c0_2] : memref<1x8x128xf32, #tpu.memory_space<vmem>>, vector<1x8x128xf32>
    %7 = vector.shape_cast %6 : vector<1x8x128xf32> to vector<8x128xf32>
    %c0_3 = arith.constant 0 : index
    %c0_4 = arith.constant 0 : index
    %c0_5 = arith.constant 0 : index
    %8 = vector.load %arg4[%c0_3, %c0_4, %c0_5] : memref<1x8x128xf32, #tpu.memory_space<vmem>>, vector<1x8x128xf32>
    %9 = vector.shape_cast %8 : vector<1x8x128xf32> to vector<8x128xf32>
    %10 = arith.subf %7, %9 : vector<8x128xf32>
    %11 = arith.mulf %10, %10 : vector<8x128xf32>
    %c0_i32_6 = arith.constant 0 : i32
    %12 = arith.addi %5, %c0_i32_6 : i32
    %13 = tpu.iota {dimensions = array<i32: 0>} : vector<8x1xi32>
    %14 = vector.broadcast %12 : i32 to vector<8x1xi32>
    %15 = arith.addi %14, %13 : vector<8x1xi32>
    %c6_i32 = arith.constant 6 : i32
    %16 = vector.broadcast %c6_i32 : i32 to vector<8x1xi32>
    %17 = arith.cmpi slt, %15, %16 : vector<8x1xi32>
    %cst = arith.constant 0.000000e+00 : f32
    %18 = vector.shape_cast %17 : vector<8x1xi1> to vector<8x1xi1>
    %19 = vector.broadcast %18 : vector<8x1xi1> to vector<8x128xi1>
    %20 = vector.broadcast %cst : f32 to vector<8x128xf32>
    %21 = arith.select %19, %11, %20 : vector<8x128xi1>, vector<8x128xf32>
    %c0_7 = arith.constant 0 : index
    %c0_8 = arith.constant 0 : index
    %c0_9 = arith.constant 0 : index
    %c0_10 = arith.constant 0 : index
    %22 = vector.load %arg5[%c0_7, %c0_8, %c0_9, %c0_10] : memref<1x1x8x128xf32, #tpu.memory_space<vmem>>, vector<1x1x8x128xf32>
    %23 = vector.shape_cast %22 : vector<1x1x8x128xf32> to vector<8x128xf32>
    %24 = vector.shape_cast %21 : vector<8x128xf32> to vector<1x8x128xf32>
    %cst_11 = arith.constant dense<0.000000e+00> : vector<8x128xf32>
    %25 = vector.multi_reduction <add>, %24, %cst_11 [0] : vector<1x8x128xf32> to vector<8x128xf32>
    %26 = arith.addf %23, %25 : vector<8x128xf32>
    %c0_12 = arith.constant 0 : index
    %c0_13 = arith.constant 0 : index
    %c0_14 = arith.constant 0 : index
    %c0_15 = arith.constant 0 : index
    %27 = vector.load %arg5[%c0_12, %c0_13, %c0_14, %c0_15] : memref<1x1x8x128xf32, #tpu.memory_space<vmem>>, vector<1x1x8x128xf32>
    %28 = vector.shape_cast %27 : vector<1x1x8x128xf32> to vector<8x128xf32>
    %29 = vector.shape_cast %26 : vector<8x128xf32> to vector<1x1x8x128xf32>
    tpu.vector_store %arg5[%c0_12, %c0_13, %c0_14, %c0_15], %29 {strides = array<i32>} : memref<1x1x8x128xf32, #tpu.memory_space<vmem>>, vector<1x1x8x128xf32>,
    return
  }
  func.func @transform_0(%arg0: i32, %arg1: i32, %arg2: i32) -> (i32, i32, i32) {
    %c1_i32 = arith.constant 1 : i32
    %0 = arith.muli %arg1, %c1_i32 : i32
    %1 = arith.addi %0, %arg2 : i32
    %c0_i32 = arith.constant 0 : i32
    %2 = arith.minsi %1, %c0_i32 : i32
    %c0_i32_0 = arith.constant 0 : i32
    %c0_i32_1 = arith.constant 0 : i32
    return %arg0, %2, %c0_i32_0 : i32, i32, i32
  }
  func.func @transform_1(%arg0: i32, %arg1: i32, %arg2: i32) -> (i32, i32, i32) {
    %c1_i32 = arith.constant 1 : i32
    %0 = arith.muli %arg1, %c1_i32 : i32
    %1 = arith.addi %0, %arg2 : i32
    %c0_i32 = arith.constant 0 : i32
    %2 = arith.minsi %1, %c0_i32 : i32
    %c0_i32_0 = arith.constant 0 : i32
    %c0_i32_1 = arith.constant 0 : i32
    return %arg0, %2, %c0_i32_0 : i32, i32, i32
  }
  func.func @transform_2(%arg0: i32, %arg1: i32, %arg2: i32) -> (i32, i32, i32, i32) {
    %c0_i32 = arith.constant 0 : i32
    %c0_i32_0 = arith.constant 0 : i32
    %c0_i32_1 = arith.constant 0 : i32
    return %arg0, %arg1, %c0_i32, %c0_i32_0 : i32, i32, i32, i32
  }
}

</mosaic_0001>

<bundles_post_ra>
// kernel: tpu_custom_call.1
= control target key start
LH: loop header
LB: loop body
LE: loop exit
PB: predicated region body
PF: predicated region fallthrough
CT: control target
= control target key end

     0   :  { %7 = vsyncpa [#allocation3], 0  ;;  %s632_s0 = inlined_call_operand.vmem [shape: f32[2,6,128], index: 0, kind: input, shape index: {}]   ;;  %s633_s1 = inlined_call_operand.vmem [shape: f32[2,6,128], index: 1, kind: input, shape index: {}]   ;;  %s634_s2 = inlined_call_operand.hbm [shape: f32[2,1,8,128], index: 2, kind: output, shape index: {}]  }
   0x1   :  { %9 = vsyncpa [#allocation3 + $0x1], 0  ;;  %s530_s9 = smov 0   ;;  %s532_s10 = smov 0  }
   0x2   :  { %s534_s11 = smov 0   ;;  %s536_s12 = smov 0  }
   0x3   :  { %s538_s13 = smov 0   ;;  %s540_s14 = smov 0  }
   0x4 LB: > { %s368_s15 = sadd.s32 4294967295, %s512_s14   ;;  %s369_s16 = sadd.s32 4294967294, %s512_s14   ;;  %s512_s14 = sphi %s540_s14, %s15_s14   ;;  %s508_s13 = sphi %s538_s13, %s641_s13   ;;  %s504_s12 = sphi %s536_s12, %s640_s12   ;;  %s500_s11 = sphi %s534_s11, %s639_s11   ;;  %s496_s10 = sphi %s532_s10, %s638_s10   ;;  %s492_s9 = sphi %s530_s9, %s637_s9  }
   0x5   : > { %s34_s17 = sadd.s32 1, %s508_s13  ;;  %s111_s18 = sadd.s32 1, %s500_s11 }
   0x6   : > { %p36_p0 = scmp.ge.s32.totalorder %s34_s17, 2  ;;  %p121_p1 = scmp.ne.s32.totalorder %s500_s11, %s496_s10 }
   0x7   : > { %p122_p2 = scmp.eq.s32.totalorder %s368_s15, 1  ;;  %p127_p3 = scmp.ne.s32.totalorder %s496_s10, %s492_s9 }
   0x8   : > { %s643_s17 = smov (%p36_p0, %s34_s17), 0  ;;  %p128_p5 = scmp.eq.s32.totalorder %s369_s16, 1 }
   0x9   : > { %p570_p4 = por %p122_p2, %p121_p1  ;;  %s106_s20 = ssub.s32 %s508_s13, %s643_s17 }
   0xa   : > { %p372_p6 = scmp.ge.s32.totalorder %s512_s14, 1  ;;  %p109_p7 = scmp.eq.s32.totalorder %s106_s20, 0 }
   0xb   : > { %p577_p8 = por %p128_p5, %p127_p3  ;;  %p178_p9 = scmp.lt.s32.totalorder %s512_s14, 3 }
   0xc   : > { %s583_s22 = scalar_select %p109_p7, %s500_s11, %s111_s18  }
   0xd   : > { %p179_p10 = pnand %p372_p6, %p178_p9 }
   0xe   : > { %p218_p11 = scmp.lt.s32.totalorder (!%p179_p10), %s504_s12, 1  ;;  %s212_s23 = sand.u32 (!%p179_p10), 1, %s496_s10  }
   0xf   : > { %182 = sbr.rel (%p179_p10) target bundleno = 44 (0x2c), region = 28  ;;  %s373_s25 = sshll.u32 (!%p179_p10), %s212_s23, 3 }
  0x10   : > { %s377_s5 = sshll.u32 (!%p179_p10), %s504_s12, 7  ;;  %s214_s6 = scalar_lea.vmem (!%p179_p10), [#allocation2], %s373_s25 }
  0x11   : > { %s279_s7 = sshll.u32 (!%p179_p10), %s214_s6, 4  ;;  %s277_s16 = scalar_lea.hbm (!%p179_p10), %s634_s2, %s377_s5  ;;  %s280_s7 = int_to_ptr.vmem [resolvable:$true] %s279_s7 }
  0x12   : > { %s265_s18 = scalar_lea.sflag (!%p179_p10), [#allocation3], %s212_s23  ;;  %s436_s20 = scalar_lea.vmem (!%p179_p10), %s280_s7, 128 }
  0x13   : > { %p437_p12 = scmp.ne.s32.totalorder (!%p179_p10), %s280_s7, %s436_s20 }
  0x14   : > { %v252_v0 = vlaneseq  ;;  %s219_s24 = scalar_select %p218_p11, %s504_s12, 1 }
  0x15   : > { %p438_p13 = pnand %p437_p12, %p570_p4 }
  0x16   : > { %s374_s26 = sshll.u32 %s219_s24, 3  ;;  %v253_v1 = vshrl.u32 %v252_v0, 7  ;;  %s514_s24 = smov [#allocation2]  }
  0x17   : > { %s224_s29 = scalar_lea.vmem %s632_s0, %s374_s26  ;;  %s237_s4 = scalar_lea.vmem %s633_s1, %s374_s26 }
  0x18   : > { %v248_v2 = vld [vmem:[%s224_s29] sm:$0xff]  ;;  %vm256_vm0 = vcmp.lt.s32.totalorder %v253_v1, 6  ;;  %p439_p0 = pneg %p438_p13  ;;  %s440_s26 = sshll.u32 %s514_s24, 4  ;;  %s441_s26 = int_to_ptr.vmem [resolvable:$false] %s440_s26 }
  0x19   : > { %v249_v3 = vld [vmem:[%s237_s4] sm:$0xff]  ;;  %s442_s27 = scalar_lea.vmem %s441_s26, 256  ;;  %p443_p1 = scmp.lt.s32.totalorder %s280_s7, %s441_s26 }
  0x1a   : > { %v250_v4 = vsub.f32 %v248_v2, %v249_v3  ;;  %p444_p2 = scmp.lt.s32.totalorder %s442_s27, %s436_s20 }
  0x1c   : > { %v251_v5 = vmul.f32 %v250_v4, %v250_v4  ;;  %p445_p3 = por %p444_p2, %p443_p1 }
  0x1e   : > { %v259_v6 = vsel %vm256_vm0, %v251_v5, 0.0  ;;  %p446_p5 = pnand %p445_p3, %p439_p0 }
  0x1f   : > { %263 = vst [vmem:[%s214_s6] sm:$0xff] %v259_v6 }
  0x20   : > { %449 = shalt.err (!%p446_p5)
}
  0x21   : > { %s450_s12 = scalar_lea.hbm %s277_s16, 128  ;;  %s454_s28 = scalar_lea.hbm %s634_s2, 256 }
  0x22   : > { %p451_p6 = scmp.ne.s32.totalorder %s277_s16, %s450_s12  ;;  %p455_p10 = scmp.lt.s32.totalorder %s277_s16, %s634_s2 }
  0x23   : > { %p456_p11 = scmp.lt.s32.totalorder %s454_s28, %s450_s12 }
  0x24   : > { %p452_p7 = pnand %p451_p6, %p570_p4 }
  0x25   : > { %p457_p12 = por %p456_p11, %p455_p10 }
  0x26   : > { %p453_p9 = pneg %p452_p7 }
  0x28   : > { %p458_p13 = pnand %p457_p12, %p453_p9 }
  0x2a   : > { %461 = shalt.err (!%p458_p13)
}
  0x2b   : > { %380 = dma.vmem_to_hbm [thread:$0]  (%p570_p4), %s280_s7, 128, %s277_s16, %s265_s18  }
  0x2c PF: > { %p386_p0 = scmp.ge.s32.totalorder %s512_s14, 2  ;;  %s291_s3 = sand.u32 1, %s492_s9  }
  0x2d   : > { %s292_s4 = scalar_lea.sflag [#allocation3], %s291_s3 }
  0x2e   : > { %p383_p1 = pnand %p386_p0, %p577_p8 }
  0x30   : > { %p384_p2 = pneg %p383_p1 }
  0x32   : > { %487 = dma.done.wait (%p384_p2), %s292_s4, 128  }
  0x33   : > { %489 = vsyncadd (%p384_p2), %s292_s4, 4294967168  ;;  %s15_s14 = sadd.s32 1, %s512_s14   ;;  %s637_s9 = smov %s496_s10 }
  0x34   : > { %p12_p3 = scmp.ge.s32.totalorder %s15_s14, 4   ;;  %s638_s10 = smov %s500_s11 }
  0x35   : > { %s639_s11 = smov %s583_s22  ;;  %s640_s12 = smov %s508_s13 }
  0x36   : > { %s641_s13 = smov %s643_s17  ;;  %14 = sbr.rel (!%p12_p3) target bundleno = 4 (0x4), region = 70 }
  0x3b   :  { %297 = vsyncpa [#allocation3], 1 }
  0x3c   :  { %299 = vsyncpa [#allocation3 + $0x1], 1 }

</bundles_post_ra>
